<compile_context>
chip_gen: v7x
topology: tpu7x:2x2x1
jax: 0.10.0
libtpu: 0.0.40
codegen_flags: <defaults>
</compile_context>

<pallas_src>
import math
import jax
import jax.numpy as jnp
from jax.experimental import pallas as pl
from jax.experimental.pallas import tpu as pltpu

HIDDEN = 32          # hidden_dim (embed dim E)
HEADS = 8            # nn.MultiheadAttention(num_heads=8)
HEAD_DIM = HIDDEN // HEADS
NUM_CLASSES = 16     # num_classes C
SEQ = 8              # sequence length L
BATCH = 2            # batch N


def attn_decoder_kernel(x_ref, w_qkv_ref, b_qkv_ref, m_ref, mt_ref,
                        w_comb_ref, b_comb_ref, y_ref):
    """Whole problem in one shot: fused QKV -> head-batched attention -> fused (out_proj∘fc)."""
    N, L, E = x_ref.shape
    H = m_ref.shape[1]
    C = y_ref.shape[-1]

    x = x_ref[...].reshape(N * L, E)                                   # (16, 32)

    # Fused QKV projection (scale already folded into the Q part in the wrapper).
    qkv = jnp.dot(x, w_qkv_ref[...],
                  preferred_element_type=jnp.float32) + b_qkv_ref[...]  # (16, 96)
    q = qkv[:, 0:E].reshape(N, L, E)          # already scaled by 1/sqrt(head_dim)
    k = qkv[:, E:2 * E].reshape(N, L, E)
    v = qkv[:, 2 * E:3 * E].reshape(N, L, E)

    # Per-head scores via block-diagonal head-reduction matrix M (E, H):
    #   t[n,i,j,e] = q[n,i,e] * k[n,j,e];   s[n,i,j,h] = sum_e t[n,i,j,e] * M[e,h]
    t = q[:, :, None, :] * k[:, None, :, :]                            # (N, L, L, E)
    s = jnp.dot(t.reshape(N * L * L, E), m_ref[...],
                preferred_element_type=jnp.float32).reshape(N, L, L, H)

    # Softmax over keys (axis 2), numerically stable.
    s = s - jnp.max(s, axis=2, keepdims=True)
    p = jnp.exp(s)
    denom = jnp.sum(p, axis=2, keepdims=True)
    p = p * pl.reciprocal(denom, approx=False)                         # exact reciprocal

    # Expand per-head probabilities back onto the E lanes and weight V:
    #   pe[n,i,j,e] = p[n,i,j,head(e)];   attn[n,i,e] = sum_j pe[n,i,j,e] * v[n,j,e]
    pe = jnp.dot(p.reshape(N * L * L, H), mt_ref[...],
                 preferred_element_type=jnp.float32).reshape(N, L, L, E)
    attn = jnp.sum(pe * v[:, None, :, :], axis=2)                      # (N, L, E)

    # Fused out_proj + fc (pre-combined in the wrapper).
    y = jnp.dot(attn.reshape(N * L, E), w_comb_ref[...],
                preferred_element_type=jnp.float32) + b_comb_ref[...]  # (16, C)
    y_ref[...] = y.reshape(N, L, C).astype(y_ref.dtype)


def attention_decoder(x, params):
    """x: (L, N, E) float32 (PyTorch batch_first=False). Returns (L, N, num_classes)."""
    w_in, b_in, w_out, b_out, w_fc, b_fc = params
    L, N, E = x.shape
    C = w_fc.shape[0]
    H, D = HEADS, HEAD_DIM
    scale = 1.0 / math.sqrt(D)

    # Fold softmax scale into the Q projection; pre-transpose so the kernel never does .T.
    w_qkv_t = jnp.concatenate([w_in[0:E] * scale, w_in[E:3 * E]], axis=0).T   # (E, 3E)
    b_qkv = jnp.concatenate([b_in[:, 0:E] * scale, b_in[:, E:3 * E]], axis=1)  # (1, 3E)

    # Algebraic fusion of out_proj and fc: y = attn @ (w_out.T @ w_fc.T) + (b_out @ w_fc.T + b_fc)
    w_comb_t = w_out.T @ w_fc.T                                                # (E, C)
    b_comb = b_out @ w_fc.T + b_fc                                             # (1, C)

    # Block-diagonal head-reduction matrix (E, H): M[e, h] = 1 iff e belongs to head h.
    m = (jnp.arange(E)[:, None] // D == jnp.arange(H)[None, :]).astype(x.dtype)  # (E, H)
    mt = m.T                                                                      # (H, E)

    xb = jnp.transpose(x, (1, 0, 2))     # (N, L, E)

    vmem = pl.BlockSpec(memory_space=pltpu.MemorySpace.VMEM)  # whole-array VMEM block
    out = pl.pallas_call(
        attn_decoder_kernel,
        out_shape=jax.ShapeDtypeStruct((N, L, C), x.dtype),
        in_specs=[vmem] * 7,
        out_specs=vmem,
    )(xb, w_qkv_t, b_qkv, m, mt, w_comb_t, b_comb)

    return jnp.transpose(out, (1, 0, 2))  # (L, N, C)


def init_params(key, hidden, num_classes):
    """Deterministic synthetic parameters with the same shapes as the PyTorch module."""
    ks = jax.random.split(key, 6)
    s = 1.0 / math.sqrt(hidden)
    w_in = jax.random.uniform(ks[0], (3 * hidden, hidden), jnp.float32, -s, s)
    b_in = jax.random.uniform(ks[1], (1, 3 * hidden), jnp.float32, -s, s)
    w_out = jax.random.uniform(ks[2], (hidden, hidden), jnp.float32, -s, s)
    b_out = jax.random.uniform(ks[3], (1, hidden), jnp.float32, -s, s)
    w_fc = jax.random.uniform(ks[4], (num_classes, hidden), jnp.float32, -s, s)
    b_fc = jax.random.uniform(ks[5], (1, num_classes), jnp.float32, -s, s)
    return (w_in, b_in, w_out, b_out, w_fc, b_fc)


def reference(x, params):
    """Pure-JAX reference replicating nn.MultiheadAttention + nn.Linear semantics (unfused)."""
    w_in, b_in, w_out, b_out, w_fc, b_fc = params
    L, N, E = x.shape
    H, D = HEADS, HEAD_DIM
    q = jnp.einsum('lne,fe->lnf', x, w_in[0:E]) + b_in[0, 0:E]
    k = jnp.einsum('lne,fe->lnf', x, w_in[E:2 * E]) + b_in[0, E:2 * E]
    v = jnp.einsum('lne,fe->lnf', x, w_in[2 * E:3 * E]) + b_in[0, 2 * E:3 * E]

    def split(t):  # (L, N, E) -> (N, H, L, D)
        return jnp.transpose(t.reshape(L, N, H, D), (1, 2, 0, 3))

    qh, kh, vh = split(q) / math.sqrt(D), split(k), split(v)
    s = jnp.einsum('nhld,nhmd->nhlm', qh, kh)
    p = jax.nn.softmax(s, axis=-1)
    o = jnp.einsum('nhlm,nhmd->nhld', p, vh)             # (N, H, L, D)
    o = jnp.transpose(o, (2, 0, 1, 3)).reshape(L, N, E)  # concat heads
    o = jnp.einsum('lne,fe->lnf', o, w_out) + b_out[0]
    return jnp.einsum('lne,ce->lnc', o, w_fc) + b_fc[0]


if __name__ == "__main__":
    key = jax.random.PRNGKey(0)
    kx, kp = jax.random.split(key)
    x = jax.random.normal(kx, (SEQ, BATCH, HIDDEN), jnp.float32)   # (L, N, E)
    params = init_params(kp, HIDDEN, NUM_CLASSES)

    y = attention_decoder(x, params)
    y = jax.block_until_ready(y)

    y_ref = reference(x, params)
    assert y.shape == (SEQ, BATCH, NUM_CLASSES)
    assert jnp.allclose(y, y_ref, atol=1e-4, rtol=1e-4), "mismatch vs JAX reference"

    print("KERNEL_OK")
</pallas_src>

<mosaic_0001>
module attributes {stable_mosaic.version = 11 : i64} {
  func.func @attn_decoder_kernel(%arg0: memref<2x8x32xf32, #tpu.memory_space<vmem>>, %arg1: memref<32x96xf32, #tpu.memory_space<vmem>>, %arg2: memref<1x96xf32, #tpu.memory_space<vmem>>, %arg3: memref<32x8xf32, #tpu.memory_space<vmem>>, %arg4: memref<8x32xf32, #tpu.memory_space<vmem>>, %arg5: memref<32x16xf32, #tpu.memory_space<vmem>>, %arg6: memref<1x16xf32, #tpu.memory_space<vmem>>, %arg7: memref<2x8x16xf32, #tpu.memory_space<vmem>>) attributes {dimension_semantics = [], scalar_prefetch = 0 : i64, scratch_operands = 0 : i64, tpu.core_type = #tpu.core_type<tc>} {
    %c0 = arith.constant 0 : index
    %c0_0 = arith.constant 0 : index
    %c0_1 = arith.constant 0 : index
    %0 = vector.load %arg0[%c0, %c0_0, %c0_1] : memref<2x8x32xf32, #tpu.memory_space<vmem>>, vector<2x8x32xf32>
    %1 = vector.shape_cast %0 : vector<2x8x32xf32> to vector<16x32xf32>
    %c0_2 = arith.constant 0 : index
    %c0_3 = arith.constant 0 : index
    %2 = vector.load %arg1[%c0_2, %c0_3] : memref<32x96xf32, #tpu.memory_space<vmem>>, vector<32x96xf32>
    %cst = arith.constant dense<0.000000e+00> : vector<16x96xf32>
    %3 = tpu.matmul %1, %2, %cst {dimension_numbers = #tpu.dot_dimension_numbers<[1], [0], [0], [1], [0, 0, 1, 1], [], []>} : vector<16x32xf32>, vector<32x96xf32>, vector<16x96xf32> -> vector<16x96xf32>
    %c0_4 = arith.constant 0 : index
    %c0_5 = arith.constant 0 : index
    %4 = vector.load %arg2[%c0_4, %c0_5] : memref<1x96xf32, #tpu.memory_space<vmem>>, vector<1x96xf32>
    %5 = vector.broadcast %4 : vector<1x96xf32> to vector<16x96xf32>
    %6 = arith.addf %3, %5 : vector<16x96xf32>
    %7 = vector.extract_strided_slice %6 {offsets = [0, 0], sizes = [16, 32], strides = [1, 1]} : vector<16x96xf32> to vector<16x32xf32>
    %8 = vector.shape_cast %7 : vector<16x32xf32> to vector<2x8x32xf32>
    %9 = vector.extract_strided_slice %6 {offsets = [0, 32], sizes = [16, 32], strides = [1, 1]} : vector<16x96xf32> to vector<16x32xf32>
    %10 = vector.shape_cast %9 : vector<16x32xf32> to vector<2x8x32xf32>
    %11 = vector.extract_strided_slice %6 {offsets = [0, 64], sizes = [16, 32], strides = [1, 1]} : vector<16x96xf32> to vector<16x32xf32>
    %12 = vector.shape_cast %11 : vector<16x32xf32> to vector<2x8x32xf32>
    %13 = vector.shape_cast %8 : vector<2x8x32xf32> to vector<2x8x1x32xf32>
    %14 = vector.shape_cast %10 : vector<2x8x32xf32> to vector<2x1x8x32xf32>
    %15 = vector.broadcast %13 : vector<2x8x1x32xf32> to vector<2x8x8x32xf32>
    %16 = vector.broadcast %14 : vector<2x1x8x32xf32> to vector<2x8x8x32xf32>
    %17 = arith.mulf %15, %16 : vector<2x8x8x32xf32>
    %18 = vector.shape_cast %17 : vector<2x8x8x32xf32> to vector<128x32xf32>
    %c0_6 = arith.constant 0 : index
    %c0_7 = arith.constant 0 : index
    %19 = vector.load %arg3[%c0_6, %c0_7] : memref<32x8xf32, #tpu.memory_space<vmem>>, vector<32x8xf32>
    %cst_8 = arith.constant dense<0.000000e+00> : vector<128x8xf32>
    %20 = tpu.matmul %18, %19, %cst_8 {dimension_numbers = #tpu.dot_dimension_numbers<[1], [0], [0], [1], [0, 0, 1, 1], [], []>} : vector<128x32xf32>, vector<32x8xf32>, vector<128x8xf32> -> vector<128x8xf32>
    %21 = vector.shape_cast %20 : vector<128x8xf32> to vector<2x8x8x8xf32>
    %cst_9 = arith.constant dense<0xFF800000> : vector<2x8x8xf32>
    %22 = vector.multi_reduction <maximumf>, %21, %cst_9 [2] : vector<2x8x8x8xf32> to vector<2x8x8xf32>
    %23 = vector.shape_cast %22 : vector<2x8x8xf32> to vector<2x8x1x8xf32>
    %24 = vector.broadcast %23 : vector<2x8x1x8xf32> to vector<2x8x8x8xf32>
    %25 = arith.subf %21, %24 : vector<2x8x8x8xf32>
    %26 = math.exp %25 : vector<2x8x8x8xf32>
    %cst_10 = arith.constant dense<0.000000e+00> : vector<2x8x8xf32>
    %27 = vector.multi_reduction <add>, %26, %cst_10 [2] : vector<2x8x8x8xf32> to vector<2x8x8xf32>
    %28 = vector.shape_cast %27 : vector<2x8x8xf32> to vector<2x8x1x8xf32>
    %29 = tpu.reciprocal %28 : vector<2x8x1x8xf32> -> vector<2x8x1x8xf32>
    %30 = vector.broadcast %29 : vector<2x8x1x8xf32> to vector<2x8x8x8xf32>
    %31 = arith.mulf %26, %30 : vector<2x8x8x8xf32>
    %32 = vector.shape_cast %31 : vector<2x8x8x8xf32> to vector<128x8xf32>
    %c0_11 = arith.constant 0 : index
    %c0_12 = arith.constant 0 : index
    %33 = vector.load %arg4[%c0_11, %c0_12] : memref<8x32xf32, #tpu.memory_space<vmem>>, vector<8x32xf32>
    %cst_13 = arith.constant dense<0.000000e+00> : vector<128x32xf32>
    %34 = tpu.matmul %32, %33, %cst_13 {dimension_numbers = #tpu.dot_dimension_numbers<[1], [0], [0], [1], [0, 0, 1, 1], [], []>} : vector<128x8xf32>, vector<8x32xf32>, vector<128x32xf32> -> vector<128x32xf32>
    %35 = vector.shape_cast %34 : vector<128x32xf32> to vector<2x8x8x32xf32>
    %36 = vector.shape_cast %12 : vector<2x8x32xf32> to vector<2x1x8x32xf32>
    %37 = vector.broadcast %36 : vector<2x1x8x32xf32> to vector<2x8x8x32xf32>
    %38 = arith.mulf %35, %37 : vector<2x8x8x32xf32>
    %cst_14 = arith.constant dense<0.000000e+00> : vector<2x8x32xf32>
    %39 = vector.multi_reduction <add>, %38, %cst_14 [2] : vector<2x8x8x32xf32> to vector<2x8x32xf32>
    %40 = vector.shape_cast %39 : vector<2x8x32xf32> to vector<16x32xf32>
    %c0_15 = arith.constant 0 : index
    %c0_16 = arith.constant 0 : index
    %41 = vector.load %arg5[%c0_15, %c0_16] : memref<32x16xf32, #tpu.memory_space<vmem>>, vector<32x16xf32>
    %cst_17 = arith.constant dense<0.000000e+00> : vector<16x16xf32>
    %42 = tpu.matmul %40, %41, %cst_17 {dimension_numbers = #tpu.dot_dimension_numbers<[1], [0], [0], [1], [0, 0, 1, 1], [], []>} : vector<16x32xf32>, vector<32x16xf32>, vector<16x16xf32> -> vector<16x16xf32>
    %c0_18 = arith.constant 0 : index
    %c0_19 = arith.constant 0 : index
    %43 = vector.load %arg6[%c0_18, %c0_19] : memref<1x16xf32, #tpu.memory_space<vmem>>, vector<1x16xf32>
    %44 = vector.broadcast %43 : vector<1x16xf32> to vector<16x16xf32>
    %45 = arith.addf %42, %44 : vector<16x16xf32>
    %46 = vector.shape_cast %45 : vector<16x16xf32> to vector<2x8x16xf32>
    %c0_20 = arith.constant 0 : index
    %c0_21 = arith.constant 0 : index
    %c0_22 = arith.constant 0 : index
    %47 = vector.load %arg7[%c0_20, %c0_21, %c0_22] : memref<2x8x16xf32, #tpu.memory_space<vmem>>, vector<2x8x16xf32>
    tpu.vector_store %arg7[%c0_20, %c0_21, %c0_22], %46 {strides = array<i32>} : memref<2x8x16xf32, #tpu.memory_space<vmem>>, vector<2x8x16xf32>,
    return
  }
}

</mosaic_0001>

<bundles_post_ra>
// kernel: tpu_custom_call.1
= control target key start
LH: loop header
LB: loop body
LE: loop exit
PB: predicated region body
PF: predicated region fallthrough
CT: control target
= control target key end

     0   :  { %vm40_vm0 = vcmask 261120   ;;  %s1920_s0 = inlined_call_operand.vmem [shape: f32[2,8,32], index: 0, kind: input, shape index: {}]   ;;  %s1921_s1 = inlined_call_operand.vmem [shape: f32[32,96], index: 1, kind: input, shape index: {}]   ;;  %s1922_s2 = inlined_call_operand.vmem [shape: f32[1,96], index: 2, kind: input, shape index: {}]   ;;  %s1923_s3 = inlined_call_operand.vmem [shape: f32[32,8], index: 3, kind: input, shape index: {}]   ;;  %s1924_s4 = inlined_call_operand.vmem [shape: f32[8,32], index: 4, kind: input, shape index: {}]   ;;  %s1925_s5 = inlined_call_operand.vmem [shape: f32[32,16], index: 5, kind: input, shape index: {}]   ;;  %s1926_s6 = inlined_call_operand.vmem [shape: f32[1,16], index: 6, kind: input, shape index: {}]   ;;  %s1927_s7 = inlined_call_operand.hbm [shape: f32[2,8,16], index: 7, kind: output, shape index: {}]  }
   0x1   :  { %v29_v0 = vld [vmem:[%s1921_s1] sm:$0xff]  ;;  %v30_v1 = vld [vmem:[%s1921_s1 + $0x8] sm:$0xff]  ;;  %v31_v2 = vld [vmem:[%s1921_s1 + $0x10] sm:$0xff] }
   0x2   :  { %v1467_v3 = vpack.c.bf16 %v30_v1, %v29_v0  ;;  %v32_v4 = vld [vmem:[%s1921_s1 + $0x18] sm:$0xff]  ;;  %v27_v5 = vld [vmem:[%s1920_s0] sm:$0xff] }
   0x3   :  { %v1471_v6 = vpack.c.bf16 %v32_v4, %v31_v2  ;;  %1395 = vmatprep.mubr.msk.f32.mxu0 %vm40_vm0, %v27_v5 }
   0x4   :  { %12 = vsyncpa [#allocation3], 0  ;;  %1468 = vmatprep.subr.bf16.mxu0 %v1467_v3  ;;  %v28_v7 = vld [vmem:[%s1920_s0 + $0x8] sm:$0xff]  ;;  %v324_v8 = vld [vmem:[%s1923_s3] sm:$0xff]  ;;  %s1585_s21 = smov 64   ;;  %s1586_s22 = smov 96   ;;  %v128_v21 = vlaneseq }
   0x5   :  { %1470 = vmatpush3.bf16.msra.mxu0 %v1467_v3  ;;  %v325_v9 = vld [vmem:[%s1923_s3 + $0x8] sm:$0xff]  ;;  %v326_v10 = vld [vmem:[%s1923_s3 + $0x10] sm:$0xff]  ;;  %v327_v12 = vld [vmem:[%s1923_s3 + $0x18] sm:$0xff]  ;;  %v1587_v19 = vmov 1966171168   ;;  %vm521_vm1 = vcmask 64512  }
   0x6   :  { %1472 = vmatprep.subr.bf16.mxu0 %v1471_v6  ;;  %v1475_v11 = vpack.c.bf16 %v325_v9, %v324_v8  ;;  %v1479_v13 = vpack.c.bf16 %v327_v12, %v326_v10  ;;  %v1300_v14 = vld [vmem:[%s1922_s2] ss:$0 sm:$0xff]  ;;  %v126_v20 = vunpack.c.l.s4 %v1587_v19  ;;  %v129_v23 = vshrl.u32 %v128_v21, 7  ;;  %s1588_s8 = smov [#allocation2]  }
   0x7   :  { %vm1181_vm2 = vcmask 1041409   ;;  %vm1183_vm3 = vcmask 1042434   ;;  %vm1185_vm4 = vcmask 1043459   ;;  %vm1187_vm5 = vcmask 1044484   ;;  %s1289_s9 = sshll.u32 %s1588_s8, 4  ;;  %s1290_s9 = int_to_ptr.vmem [resolvable:$true] %s1289_s9 }
   0x8   :  { %1476 = vmatprep.subr.bf16.mxu1 %v1475_v11  ;;  %v127_v22 = vunpack.c.0.s8 %v126_v20  ;;  %v1666_v29 = vsub.s32 0, %v129_v23  ;;  %vm1189_vm6 = vcmask 1045509   ;;  %vm1191_vm7 = vcmask 1046534   ;;  %s1561_s10 = scalar_lea.vmem %s1290_s9, 256  ;;  %p1566_p1 = scmp.lt.s32.totalorder %s1290_s9, %s1290_s9 }
   0x9   :  { %1474 = vmatpush3.bf16.msra.mxu0 %v1471_v6  ;;  %1478 = vmatpush3.bf16.msra.mxu1 %v1475_v11  ;;  %vm1193_vm8 = vcmask 1047559   ;;  %vm1281_vm9 = vcmask 130048   ;;  %p1562_p0 = scmp.ne.s32.totalorder %s1290_s9, %s1561_s10  ;;  %p1567_p2 = scmp.lt.s32.totalorder %s1561_s10, %s1561_s10 }
   0xa   :  { %1480 = vmatprep.subr.bf16.mxu1 %v1479_v13  ;;  %v130_v24 = vsub.s32 %v127_v22, %v129_v23  ;;  %v826_v22 = vld [vmem:[%s1924_s4] sm:$0xff] }
   0xb   :  { %1430 = vmatprep.subr.mxu0 %v826_v22  ;;  %p1568_p3 = por %p1567_p2, %p1566_p1 }
   0xc   :  { %1396 = vmatmul.mubr.msk.f32.vlgmr.msra.gmra.mrb[0].mxu0 %vm40_vm0, %v28_v7 }
   0xd   :  { %1482 = vmatpush3.bf16.msra.mxu1 %v1479_v13  ;;  %1431 = vmatpush3.msra.mxu0 %v826_v22  ;;  %p1569_p4 = pnand %p1568_p3, %p1562_p0 }
  0xdf   :  { %v1397_v15 = vpop.f32.mrb[0].mxu0 }
  0xe0   :  { %v113_v16 = vpop.f32.mrb[1].mxu0  ;;  %v119_v18 = vadd.f32 %v1397_v15, %v1300_v14 }
  0xe1   :  { %v114_v17 = vadd.f32 %v1300_v14, %v113_v16 }
  0xe2   :  { %v180_v43 = vrot.slane %v119_v18, %v130_v24  ;;  %v173_v50 = vcombine.high %v119_v18, %v119_v18 }
  0xe3   :  { %1020 = vrot.lane.b32.xlu1 %v114_v17, %s1585_s21  ;;  %302 = vrot.lane.b32.xlu0 %v114_v17, %s1586_s22  ;;  %v131_v25 = vrot.slane %v114_v17, %v130_v24  ;;  %v124_v27 = vcombine.high %v114_v17, %v114_v17 }
  0xe4   :  { %v188_v51 = vcombine.high %v180_v43, %v180_v43  ;;  %v196_v54 = vrot.slane %v180_v43, %v130_v24  ;;  %v187_v58 = vrot.slane %v173_v50, %v130_v24 }
  0xe5   :  { %v139_v26 = vcombine.high %v131_v25, %v131_v25  ;;  %v147_v28 = vrot.slane %v131_v25, %v130_v24  ;;  %v138_v31 = vrot.slane %v124_v27, %v130_v24 }
  0xe6   :  { %v210_v61 = vrot.slane %v188_v51, %v130_v24  ;;  %v257_v62 = vrot.slane %v196_v54, %v1666_v29  ;;  %v218_v63 = vcombine.high %v196_v54, %v196_v54  ;;  %v189_v2 = vcombine.high %v187_v58, %v187_v58 }
  0xe7   :  { %1022 = vrot.lane.b32.xlu1 %v119_v18, %s1585_s21  ;;  %304 = vrot.lane.b32.xlu0 %v119_v18, %s1586_s22  ;;  %v161_v30 = vrot.slane %v139_v26, %v130_v24  ;;  %v169_v32 = vcombine.high %v147_v28, %v147_v28  ;;  %v225_v33 = vrot.slane %v147_v28, %v1666_v29 }
  0xe8   :  { %v140_v35 = vcombine.high %v138_v31, %v138_v31  ;;  %v154_v41 = vrot.slane %v138_v31, %v130_v24  ;;  %v261_v3 = vrot.slane %v210_v61, %v1666_v29  ;;  %v220_v4 = vcombine.high %v210_v61, %v210_v61 }
  0xe9   :  { %v229_v34 = vrot.slane %v161_v30, %v1666_v29  ;;  %v171_v37 = vcombine.high %v161_v30, %v161_v30  ;;  %v233_v40 = vrot.slane %v169_v32, %v1666_v29  ;;  %v265_v5 = vrot.slane %v218_v63, %v1666_v29 }
  0xea   :  { %v168_v45 = vrot.slane %v140_v35, %v130_v24  ;;  %v241_v46 = vrot.slane %v154_v41, %v1666_v29  ;;  %v170_v47 = vcombine.high %v154_v41, %v154_v41  ;;  %v203_v6 = vrot.slane %v187_v58, %v130_v24 }
  0xeb   :  { %v237_v44 = vrot.slane %v171_v37, %v1666_v29  ;;  %v269_v9 = vrot.slane %v220_v4, %v1666_v29  ;;  %v217_v10 = vrot.slane %v189_v2, %v130_v24 }
  0xec   :  { %v245_v52 = vrot.slane %v168_v45, %v1666_v29  ;;  %v172_v53 = vcombine.high %v168_v45, %v168_v45  ;;  %v249_v55 = vrot.slane %v170_v47, %v1666_v29  ;;  %v273_v11 = vrot.slane %v203_v6, %v1666_v29 }
  0xed   :  { %v219_v12 = vcombine.high %v203_v6, %v203_v6  ;;  %v277_v15 = vrot.slane %v217_v10, %v1666_v29  ;;  %v221_v16 = vcombine.high %v217_v10, %v217_v10 }
  0xee   :  { %v253_v60 = vrot.slane %v172_v53, %v1666_v29 }
  0xef   :  { %v281_v17 = vrot.slane %v219_v12, %v1666_v29  ;;  %v285_v20 = vrot.slane %v221_v16, %v1666_v29 }
 0x155   :  { %v303_v36 = vpop.permute.xlu0 %302 }
 0x156   :  { %v308_v38 = vmul.f32 %v303_v36, %v225_v33  ;;  %v309_v39 = vmul.f32 %v303_v36, %v229_v34  ;;  %v310_v42 = vmul.f32 %v303_v36, %v233_v40  ;;  %v311_v48 = vmul.f32 %v303_v36, %v237_v44 }
 0x157   :  { %v312_v49 = vmul.f32 %v303_v36, %v241_v46  ;;  %v313_v56 = vmul.f32 %v303_v36, %v245_v52  ;;  %v314_v57 = vmul.f32 %v303_v36, %v249_v55  ;;  %v315_v0 = vmul.f32 %v303_v36, %v253_v60 }
 0x158   :  { %1406 = vmatprep.mubr.msk.f32.mxu1 %vm40_vm0, %v308_v38 }
 0x159   :  { %1407 = vmatmul.mubr.msk.f32.vlgmr.msra.gmra.mrb[0].mxu1 %vm40_vm0, %v309_v39  ;;  %v305_v59 = vpop.permute.xlu0 %304 }
 0x15a   :  { %1409 = vmatprep.mubr.msk.f32.mxu1 %vm40_vm0, %v310_v42  ;;  %v316_v1 = vmul.f32 %v305_v59, %v257_v62  ;;  %v317_v7 = vmul.f32 %v305_v59, %v261_v3  ;;  %v318_v8 = vmul.f32 %v305_v59, %v265_v5  ;;  %v319_v13 = vmul.f32 %v305_v59, %v269_v9 }
 0x15b   :  { %v320_v14 = vmul.f32 %v305_v59, %v273_v11  ;;  %v321_v18 = vmul.f32 %v305_v59, %v277_v15  ;;  %v322_v19 = vmul.f32 %v305_v59, %v281_v17  ;;  %v323_v21 = vmul.f32 %v305_v59, %v285_v20 }
 0x15d   :  { %1410 = vmatmul.mubr.msk.f32.gmra.mrb[2].mxu1 %vm40_vm0, %v311_v48 }
 0x15e   :  { %1412 = vmatprep.mubr.msk.f32.mxu1 %vm40_vm0, %v312_v49 }
 0x161   :  { %1413 = vmatmul.mubr.msk.f32.gmra.mrb[4].mxu1 %vm40_vm0, %v313_v56 }
 0x162   :  { %1415 = vmatprep.mubr.msk.f32.mxu1 %vm40_vm0, %v314_v57 }
 0x165   :  { %1416 = vmatmul.mubr.msk.f32.gmra.mrb[6].mxu1 %vm40_vm0, %v315_v0 }
 0x166   :  { %1418 = vmatprep.mubr.msk.f32.mxu1 %vm40_vm0, %v316_v1 }
 0x169   :  { %1419 = vmatmul.mubr.msk.f32.gmra.mrb[8].mxu1 %vm40_vm0, %v317_v7 }
 0x16a   :  { %1421 = vmatprep.mubr.msk.f32.mxu1 %vm40_vm0, %v318_v8 }
 0x16d   :  { %1422 = vmatmul.mubr.msk.f32.gmra.mrb[10].mxu1 %vm40_vm0, %v319_v13 }
 0x16e   :  { %1424 = vmatprep.mubr.msk.f32.mxu1 %vm40_vm0, %v320_v14 }
 0x171   :  { %1425 = vmatmul.mubr.msk.f32.gmra.mrb[12].mxu1 %vm40_vm0, %v321_v18 }
 0x172   :  { %1427 = vmatprep.mubr.msk.f32.mxu1 %vm40_vm0, %v322_v19 }
 0x175   :  { %1428 = vmatmul.mubr.msk.f32.gmra.mrb[14].mxu1 %vm40_vm0, %v323_v21 }
 0x22c   :  { %v1408_v23 = vpop.f32.mrb[0].mxu1 }
 0x22d   :  { %v529_v24 = vsel %vm521_vm1, %v1408_v23, -inf  ;;  %v442_v25 = vpop.f32.mrb[1].mxu1 }
 0x22e   :  { %v530_v26 = vrot.slane %v529_v24, 4  ;;  %v522_v27 = vsel %vm521_vm1, %v442_v25, -inf }
 0x22f   :  { %v523_v28 = vrot.slane %v522_v27, 4 }
 0x230   :  { %v531_v29 = vmax.f32 %v529_v24, %v530_v26  ;;  %v1411_v30 = vpop.f32.mrb[2].mxu1 }
 0x231   :  { %v524_v31 = vmax.f32 %v522_v27, %v523_v28  ;;  %v543_v32 = vsel %vm521_vm1, %v1411_v30, -inf  ;;  %v452_v33 = vpop.f32.mrb[3].mxu1 }
 0x232   :  { %v532_v34 = vrot.slane %v531_v29, 2  ;;  %v544_v35 = vrot.slane %v543_v32, 4  ;;  %v536_v36 = vsel %vm521_vm1, %v452_v33, -inf }
 0x233   :  { %v525_v37 = vrot.slane %v524_v31, 2  ;;  %v537_v38 = vrot.slane %v536_v36, 4 }
 0x234   :  { %v533_v39 = vmax.f32 %v531_v29, %v532_v34  ;;  %v545_v40 = vmax.f32 %v543_v32, %v544_v35  ;;  %v1707_v41 = vpop.f32.mrb[4].mxu1 }
 0x235   :  { %v526_v42 = vmax.f32 %v524_v31, %v525_v37  ;;  %v538_v43 = vmax.f32 %v536_v36, %v537_v38  ;;  %v557_v44 = vsel %vm521_vm1, %v1707_v41, -inf  ;;  %v1711_v45 = vpop.f32.mrb[5].mxu1 }
 0x236   :  { %v534_v46 = vrot.slane %v533_v39, 1  ;;  %v546_v47 = vrot.slane %v545_v40, 2  ;;  %v558_v48 = vrot.slane %v557_v44, 4  ;;  %v550_v49 = vsel %vm521_vm1, %v1711_v45, -inf }
 0x237   :  { %v527_v50 = vrot.slane %v526_v42, 1  ;;  %v539_v51 = vrot.slane %v538_v43, 2  ;;  %v551_v52 = vrot.slane %v550_v49, 4 }
 0x238   :  { %v535_v53 = vmax.f32 %v533_v39, %v534_v46  ;;  %v547_v54 = vmax.f32 %v545_v40, %v546_v47  ;;  %v559_v55 = vmax.f32 %v557_v44, %v558_v48  ;;  %v1715_v56 = vpop.f32.mrb[6].mxu1 }
 0x239   :  { %v528_v57 = vmax.f32 %v526_v42, %v527_v50  ;;  %v540_v58 = vmax.f32 %v538_v43, %v539_v51  ;;  %v552_v59 = vmax.f32 %v550_v49, %v551_v52  ;;  %v571_v60 = vsel %vm521_vm1, %v1715_v56, -inf  ;;  %v1719_v61 = vpop.f32.mrb[7].mxu1 }
 0x23a   :  { %v635_v62 = vsub.f32 %v1408_v23, %v535_v53  ;;  %v548_v63 = vrot.slane %v547_v54, 1  ;;  %v560_v0 = vrot.slane %v559_v55, 2  ;;  %v572_v1 = vrot.slane %v571_v60, 4 }
 0x23b   :  { %v634_v2 = vsub.f32 %v442_v25, %v528_v57  ;;  %v541_v3 = vrot.slane %v540_v58, 1  ;;  %v553_v4 = vrot.slane %v552_v59, 2  ;;  %v564_v5 = vsel %vm521_vm1, %v1719_v61, -inf }
 0x23c   :  { %v652_v6 = vmul.f32 1.442695, %v635_v62  ;;  %v549_v7 = vmax.f32 %v547_v54, %v548_v63  ;;  %v561_v8 = vmax.f32 %v559_v55, %v560_v0  ;;  %v573_v9 = vmax.f32 %v571_v60, %v572_v1  ;;  %v1723_v10 = vpop.f32.mrb[8].mxu1 }
 0x23d   :  { %v650_v11 = vmul.f32 1.442695, %v634_v2  ;;  %v542_v12 = vmax.f32 %v540_v58, %v541_v3  ;;  %v554_v13 = vmax.f32 %v552_v59, %v553_v4  ;;  %v565_v14 = vrot.slane %v564_v5, 4  ;;  %v1725_v15 = vpop.f32.mrb[9].mxu1 }
 0x23e   :  { %1497 = vpow2.f32 %v652_v6  ;;  %v637_v16 = vsub.f32 %v1411_v30, %v549_v7  ;;  %v562_v17 = vrot.slane %v561_v8, 1  ;;  %v574_v18 = vrot.slane %v573_v9, 2 }
 0x23f   :  { %1499 = vpow2.f32 %v650_v11  ;;  %v636_v19 = vsub.f32 %v452_v33, %v542_v12  ;;  %v555_v20 = vrot.slane %v554_v13, 1  ;;  %v566_v21 = vmax.f32 %v564_v5, %v565_v14 }
 0x240   :  { %v656_v22 = vmul.f32 1.442695, %v637_v16  ;;  %v563_v23 = vmax.f32 %v561_v8, %v562_v17  ;;  %v575_v24 = vmax.f32 %v573_v9, %v574_v18  ;;  %v585_v25 = vsel %vm521_vm1, %v1723_v10, -inf  ;;  %v1729_v26 = vpop.f32.mrb[10].mxu1 }
 0x241   :  { %v654_v27 = vmul.f32 1.442695, %v636_v19  ;;  %v556_v28 = vmax.f32 %v554_v13, %v555_v20  ;;  %v567_v29 = vrot.slane %v566_v21, 2  ;;  %v586_v31 = vrot.slane %v585_v25, 4  ;;  %v1731_v32 = vpop.f32.mrb[11].mxu1 }
 0x242   :  { %1501 = vpow2.f32 %v656_v22  ;;  %v639_v30 = vsub.f32 %v1707_v41, %v563_v23  ;;  %v576_v33 = vrot.slane %v575_v24, 1  ;;  %v578_v34 = vsel %vm521_vm1, %v1725_v15, -inf }
 0x243   :  { %1503 = vpow2.f32 %v654_v27  ;;  %v638_v35 = vsub.f32 %v1711_v45, %v556_v28  ;;  %v568_v36 = vmax.f32 %v566_v21, %v567_v29  ;;  %v587_v37 = vmax.f32 %v585_v25, %v586_v31 }
 0x244   :  { %v660_v38 = vmul.f32 1.442695, %v639_v30  ;;  %v577_v39 = vmax.f32 %v575_v24, %v576_v33  ;;  %v579_v40 = vrot.slane %v578_v34, 4  ;;  %v599_v42 = vsel %vm521_vm1, %v1729_v26, -inf  ;;  %v1739_v43 = vpop.f32.mrb[12].mxu1 }
 0x245   :  { %v658_v44 = vmul.f32 1.442695, %v638_v35  ;;  %v569_v46 = vrot.slane %v568_v36, 1  ;;  %v588_v41 = vrot.slane %v587_v37, 2  ;;  %v600_v47 = vrot.slane %v599_v42, 4  ;;  %v1741_v48 = vpop.f32.mrb[13].mxu1 }
 0x246   :  { %1505 = vpow2.f32 %v660_v38  ;;  %v641_v49 = vsub.f32 %v1715_v56, %v577_v39  ;;  %v580_v45 = vmax.f32 %v578_v34, %v579_v40  ;;  %v592_v57 = vsel %vm521_vm1, %v1731_v32, -inf }
 0x247   :  { %1507 = vpow2.f32 %v658_v44  ;;  %v570_v50 = vmax.f32 %v568_v36, %v569_v46  ;;  %v589_v51 = vmax.f32 %v587_v37, %v588_v41  ;;  %v601_v52 = vmax.f32 %v599_v42, %v600_v47 }
 0x248   :  { %v1744_v53 = vpop.eup %1497  ;;  %v664_v54 = vmul.f32 1.442695, %v641_v49  ;;  %v581_v55 = vrot.slane %v580_v45, 2  ;;  %v1748_v58 = vpop.f32.mrb[14].mxu1  ;;  %v593_v12 = vrot.slane %v592_v57, 4  ;;  %v613_v24 = vsel %vm521_vm1, %v1739_v43, -inf }
 0x249   :  { %v1750_v59 = vpop.eup %1499  ;;  %v689_v60 = vsel %vm521_vm1, %v1744_v53, 0.0  ;;  %v640_v56 = vsub.f32 %v1719_v61, %v570_v50  ;;  %v590_v62 = vrot.slane %v589_v51, 1  ;;  %v602_v63 = vrot.slane %v601_v52, 2  ;;  %v1755_v0 = vpop.f32.mrb[15].mxu1 }
 0x24a   :  { %v690_v1 = vrot.slane %v689_v60, 4  ;;  %v682_v2 = vsel %vm521_vm1, %v1750_v59, 0.0  ;;  %1509 = vpow2.f32 %v664_v54  ;;  %v582_v3 = vmax.f32 %v580_v45, %v581_v55 }
 0x24b   :  { %v683_v4 = vrot.slane %v682_v2, 4  ;;  %v662_v5 = vmul.f32 1.442695, %v640_v56  ;;  %v591_v6 = vmax.f32 %v589_v51, %v590_v62  ;;  %v603_v11 = vmax.f32 %v601_v52, %v602_v63 }
 0x24c   :  { %v1759_v7 = vpop.eup %1501  ;;  %v691_v8 = vadd.f32 %v690_v1, %v689_v60  ;;  %v583_v9 = vrot.slane %v582_v3, 1  ;;  %v594_v34 = vmax.f32 %v592_v57, %v593_v12  ;;  %v614_v47 = vrot.slane %v613_v24, 4 }
 0x24d   :  { %v1761_v61 = vpop.eup %1503  ;;  %v684_v13 = vadd.f32 %v683_v4, %v682_v2  ;;  %v703_v14 = vsel %vm521_vm1, %v1759_v7, 0.0  ;;  %1511 = vpow2.f32 %v662_v5  ;;  %v643_v16 = vsub.f32 %v1723_v10, %v591_v6 }
 0x24e   :  { %v692_v17 = vrot.slane %v691_v8, 2  ;;  %v704_v18 = vrot.slane %v703_v14, 4  ;;  %v696_v19 = vsel %vm521_vm1, %v1761_v61, 0.0  ;;  %v584_v20 = vmax.f32 %v582_v3, %v583_v9 }
 0x24f   :  { %v685_v21 = vrot.slane %v684_v13, 2  ;;  %v697_v22 = vrot.slane %v696_v19, 4  ;;  %v668_v23 = vmul.f32 1.442695, %v643_v16  ;;  %v604_v31 = vrot.slane %v603_v11, 1 }
 0x250   :  { %v1770_v25 = vpop.eup %1505  ;;  %v693_v27 = vadd.f32 %v692_v17, %v691_v8  ;;  %v705_v28 = vadd.f32 %v704_v18, %v703_v14  ;;  %v642_v29 = vsub.f32 %v1725_v15, %v584_v20  ;;  %v595_v51 = vrot.slane %v594_v34, 2 }
 0x251   :  { %v1773_v10 = vpop.eup %1507  ;;  %v698_v30 = vadd.f32 %v697_v22, %v696_v19  ;;  %v717_v33 = vsel %vm521_vm1, %v1770_v25, 0.0  ;;  %1513 = vpow2.f32 %v668_v23  ;;  %v686_v35 = vadd.f32 %v685_v21, %v684_v13 }
 0x252   :  { %v706_v36 = vrot.slane %v705_v28, 2  ;;  %v718_v37 = vrot.slane %v717_v33, 4  ;;  %v710_v38 = vsel %vm521_vm1, %v1773_v10, 0.0  ;;  %v666_v42 = vmul.f32 1.442695, %v642_v29 }
 0x253   :  { %v699_v39 = vrot.slane %v698_v30, 2  ;;  %v711_v40 = vrot.slane %v710_v38, 4  ;;  %v694_v15 = vrot.slane %v693_v27, 1  ;;  %v605_v41 = vmax.f32 %v603_v11, %v604_v31 }
 0x254   :  { %v1779_v44 = vpop.eup %1509  ;;  %v719_v46 = vadd.f32 %v718_v37, %v717_v33  ;;  %v707_v49 = vadd.f32 %v706_v36, %v705_v28  ;;  %v687_v52 = vrot.slane %v686_v35, 1  ;;  %1515 = vpow2.f32 %v666_v42 }
 0x255   :  { %v712_v45 = vadd.f32 %v711_v40, %v710_v38  ;;  %v731_v50 = vsel %vm521_vm1, %v1779_v44, 0.0  ;;  %v700_v54 = vadd.f32 %v699_v39, %v698_v30  ;;  %v645_v62 = vsub.f32 %v1729_v26, %v605_v41 }
 0x256   :  { %v720_v55 = vrot.slane %v719_v46, 2  ;;  %v732_v57 = vrot.slane %v731_v50, 4  ;;  %v695_v63 = vadd.f32 %v694_v15, %v693_v27  ;;  %v708_v3 = vrot.slane %v707_v49, 1 }
 0x257   :  { %v1783_v60 = vpop.eup %1511  ;;  %v713_v56 = vrot.slane %v712_v45, 2  ;;  %v672_v6 = vmul.f32 1.442695, %v645_v62  ;;  %v688_v8 = vadd.f32 %v687_v52, %v686_v35  ;;  %v701_v9 = vrot.slane %v700_v54, 1 }
 0x258   :  { %v721_v1 = vadd.f32 %v720_v55, %v719_v46  ;;  %v724_v2 = vsel %vm521_vm1, %v1783_v60, 0.0  ;;  %v733_v4 = vadd.f32 %v732_v57, %v731_v50  ;;  %v596_v11 = vmax.f32 %v594_v34, %v595_v51 }
 0x259   :  { %v725_v5 = vrot.slane %v724_v2, 4  ;;  %v615_v12 = vmax.f32 %v613_v24, %v614_v47  ;;  %v714_v14 = vadd.f32 %v713_v56, %v712_v45  ;;  %1517 = vpow2.f32 %v672_v6 }
 0x25a   :  { %v606_v26 = vsel %vm521_vm1, %v1741_v48, -inf  ;;  %1519 = vrcp.f32 %v695_v63  ;;  %v722_v17 = vrot.slane %v721_v1, 1  ;;  %v597_v19 = vrot.slane %v596_v11, 1 }
 0x25b   :  { %v1788_v13 = vpop.eup %1513  ;;  %v726_v16 = vadd.f32 %v725_v5, %v724_v2  ;;  %v709_v20 = vadd.f32 %v708_v3, %v707_v49  ;;  %v734_v21 = vrot.slane %v733_v4, 2  ;;  %v616_v23 = vrot.slane %v615_v12, 2 }
 0x25c   :  { %v745_v18 = vsel %vm521_vm1, %v1788_v13, 0.0  ;;  %v702_v27 = vadd.f32 %v701_v9, %v700_v54  ;;  %v598_v24 = vmax.f32 %v596_v11, %v597_v19  ;;  %v607_v28 = vrot.slane %v606_v26, 4 }
 0x25d   :  { %v746_v22 = vrot.slane %v745_v18, 4  ;;  %v627_v29 = vsel %vm521_vm1, %v1748_v58, -inf  ;;  %v715_v31 = vrot.slane %v714_v14, 1  ;;  %v727_v30 = vrot.slane %v726_v16, 2 }
 0x25e   :  { %v617_v33 = vmax.f32 %v615_v12, %v616_v23  ;;  %v628_v34 = vrot.slane %v627_v29, 4  ;;  %v723_v35 = vadd.f32 %v722_v17, %v721_v1  ;;  %v644_v36 = vsub.f32 %v1731_v32, %v598_v24  ;;  %v1799_v39 = vpop.eup %1515 }
 0x25f   :  { %v608_v37 = vmax.f32 %v606_v26, %v607_v28  ;;  %v620_v38 = vsel %vm521_vm1, %v1755_v0, -inf  ;;  %v735_v40 = vadd.f32 %v734_v21, %v733_v4  ;;  %v747_v42 = vadd.f32 %v746_v22, %v745_v18 }
 0x260   :  { %v618_v15 = vrot.slane %v617_v33, 1  ;;  %v629_v46 = vmax.f32 %v627_v29, %v628_v34  ;;  %v738_v41 = vsel %vm521_vm1, %v1799_v39, 0.0  ;;  %v670_v47 = vmul.f32 1.442695, %v644_v36 }
 0x261   :  { %v609_v49 = vrot.slane %v608_v37, 2  ;;  %v621_v45 = vrot.slane %v620_v38, 4  ;;  %v716_v50 = vadd.f32 %v715_v31, %v714_v14  ;;  %v728_v51 = vadd.f32 %v727_v30, %v726_v16 }
 0x262   :  { %v739_v52 = vrot.slane %v738_v41, 4  ;;  %v619_v32 = vmax.f32 %v617_v33, %v618_v15  ;;  %1521 = vpow2.f32 %v670_v47  ;;  %v630_v55 = vrot.slane %v629_v46, 2 }
 0x263   :  { %v610_v54 = vmax.f32 %v608_v37, %v609_v49  ;;  %v622_v57 = vmax.f32 %v620_v38, %v621_v45  ;;  %v1803_v56 = vpop.eup %1517  ;;  %v748_v62 = vrot.slane %v747_v42, 2  ;;  %1523 = vrcp.f32 %v688_v8 }
 0x264   :  { %v740_v63 = vadd.f32 %v739_v52, %v738_v41  ;;  %v647_v1 = vsub.f32 %v1739_v43, %v619_v32  ;;  %v1520_v2 = vpop.eup %1519  ;;  %v759_v3 = vsel %vm521_vm1, %v1803_v56, 0.0  ;;  %v631_v5 = vmax.f32 %v629_v46, %v630_v55 }
 0x265   :  { %v611_v4 = vrot.slane %v610_v54, 1  ;;  %v623_v6 = vrot.slane %v622_v57, 2  ;;  %v729_v9 = vrot.slane %v728_v51, 1  ;;  %v760_v12 = vrot.slane %v759_v3, 4 }
 0x266   :  { %v741_v11 = vrot.slane %v740_v63, 2  ;;  %v676_v14 = vmul.f32 1.442695, %v647_v1  ;;  %v736_v16 = vrot.slane %v735_v40, 1  ;;  %v632_v17 = vrot.slane %v631_v5, 1 }
 0x267   :  { %v612_v26 = vmax.f32 %v610_v54, %v611_v4  ;;  %v624_v18 = vmax.f32 %v622_v57, %v623_v6  ;;  %v749_v19 = vadd.f32 %v748_v62, %v747_v42  ;;  %v761_v22 = vadd.f32 %v760_v12, %v759_v3 }
 0x268   :  { %v742_v21 = vadd.f32 %v741_v11, %v740_v63  ;;  %1525 = vpow2.f32 %v676_v14  ;;  %v633_v8 = vmax.f32 %v631_v5, %v632_v17  ;;  %v730_v24 = vadd.f32 %v729_v9, %v728_v51 }
 0x269   :  { %v646_v43 = vsub.f32 %v1741_v48, %v612_v26  ;;  %v625_v23 = vrot.slane %v624_v18, 1  ;;  %1527 = vrcp.f32 %v702_v27  ;;  %v762_v29 = vrot.slane %v761_v22, 2 }
 0x26a   :  { %v743_v28 = vrot.slane %v742_v21, 1  ;;  %1529 = vrcp.f32 %v709_v20  ;;  %v649_v30 = vsub.f32 %v1748_v58, %v633_v8  ;;  %v737_v34 = vadd.f32 %v736_v16, %v735_v40 }
 0x26b   :  { %v674_v31 = vmul.f32 1.442695, %v646_v43  ;;  %v626_v33 = vmax.f32 %v624_v18, %v625_v23  ;;  %1531 = vrcp.f32 %v716_v50  ;;  %v750_v36 = vrot.slane %v749_v19, 1 }
 0x26c   :  { %1533 = vrcp.f32 %v723_v35  ;;  %v1810_v37 = vpop.eup %1521  ;;  %v680_v38 = vmul.f32 1.442695, %v649_v30  ;;  %v744_v27 = vadd.f32 %v743_v28, %v742_v21  ;;  %v763_v15 = vadd.f32 %v762_v29, %v761_v22 }
 0x26d   :  { %1535 = vpow2.f32 %v674_v31  ;;  %v648_v48 = vsub.f32 %v1755_v0, %v626_v33  ;;  %v1524_v42 = vpop.eup %1523  ;;  %v752_v20 = vsel %vm521_vm1, %v1810_v37, 0.0  ;;  %v751_v41 = vadd.f32 %v750_v36, %v749_v19 }
 0x26e   :  { %1537 = vrcp.f32 %v730_v24  ;;  %v753_v46 = vrot.slane %v752_v20, 4  ;;  %v810_v40 = vmul.f32 %v1524_v42, %v1750_v59  ;;  %v811_v35 = vmul.f32 %v1520_v2, %v1744_v53 }
 0x26f   :  { %1539 = vpow2.f32 %v680_v38  ;;  %v678_v58 = vmul.f32 1.442695, %v648_v48  ;;  %v764_v49 = vrot.slane %v763_v15, 1 }
 0x270   :  { %1541 = vrcp.f32 %v737_v34  ;;  %v754_v47 = vadd.f32 %v753_v46, %v752_v20  ;;  %1432 = vmatprep.mubr.msk.f32.mxu0 %vm521_vm1, %v810_v40 }
 0x271   :  { %1543 = vpow2.f32 %v678_v58  ;;  %1433 = vmatmul.mubr.msk.f32.vlgmr.msra.gmra.mrb[2].mxu0 %vm521_vm1, %v811_v35  ;;  %v765_v62 = vadd.f32 %v764_v49, %v763_v15 }
 0x272   :  { %v1818_v0 = vpop.eup %1525  ;;  %1545 = vrcp.f32 %v744_v27  ;;  %v755_v50 = vrot.slane %v754_v47, 2 }
 0x273   :  { %v1528_v45 = vpop.eup %1527  ;;  %v773_v51 = vsel %vm521_vm1, %v1818_v0, 0.0  ;;  %1547 = vrcp.f32 %v751_v41 }
 0x274   :  { %v1530_v59 = vpop.eup %1529  ;;  %v774_v52 = vrot.slane %v773_v51, 4  ;;  %v812_v53 = vmul.f32 %v1528_v45, %v1761_v61  ;;  %v756_v54 = vadd.f32 %v755_v50, %v754_v47  ;;  %1549 = vrcp.f32 %v765_v62 }
 0x275   :  { %v1532_v32 = vpop.eup %1531  ;;  %v813_v55 = vmul.f32 %v1530_v59, %v1759_v7  ;;  %v1156_v59 = vld [vmem:[%s1925_s5 + $0x10] sm:$0xff] }
 0x276   :  { %v1534_v57 = vpop.eup %1533  ;;  %v775_v63 = vadd.f32 %v774_v52, %v773_v51  ;;  %1435 = vmatprep.mubr.msk.f32.mxu0 %vm521_vm1, %v812_v53  ;;  %v814_v1 = vmul.f32 %v1532_v32, %v1773_v10  ;;  %v757_v3 = vrot.slane %v756_v54, 1  ;;  %v1157_v52 = vld [vmem:[%s1925_s5 + $0x18] sm:$0xff]  ;;  %v1021_v32 = vpop.permute.xlu1 %1020 }
 0x277   :  { %v1536_v2 = vpop.eup %1535  ;;  %1436 = vmatmul.mubr.msk.f32.gmra.mrb[4].mxu0 %vm521_vm1, %v813_v55  ;;  %v815_v11 = vmul.f32 %v1534_v57, %v1770_v25  ;;  %v1487_v53 = vpack.c.bf16 %v1157_v52, %v1156_v59 }
 0x278   :  { %v1538_v4 = vpop.eup %1537  ;;  %v776_v5 = vrot.slane %v775_v63, 2  ;;  %v766_v61 = vsel %vm521_vm1, %v1536_v2, 0.0  ;;  %1438 = vmatprep.mubr.msk.f32.mxu0 %vm521_vm1, %v814_v1  ;;  %v758_v9 = vadd.f32 %v757_v3, %v756_v54 }
 0x279   :  { %v1540_v6 = vpop.eup %1539  ;;  %v767_v7 = vrot.slane %v766_v61, 4  ;;  %v816_v12 = vmul.f32 %v1538_v4, %v1783_v60 }
 0x27a   :  { %v1542_v14 = vpop.eup %1541  ;;  %v777_v16 = vadd.f32 %v776_v5, %v775_v63  ;;  %v787_v10 = vsel %vm521_vm1, %v1540_v6, 0.0  ;;  %1551 = vrcp.f32 %v758_v9 }
 0x27b   :  { %v1544_v26 = vpop.eup %1543  ;;  %v768_v17 = vadd.f32 %v767_v7, %v766_v61  ;;  %v788_v18 = vrot.slane %v787_v10, 4  ;;  %1439 = vmatmul.mubr.msk.f32.gmra.mrb[6].mxu0 %vm521_vm1, %v815_v11  ;;  %v817_v25 = vmul.f32 %v1542_v14, %v1779_v44 }
 0x27c   :  { %v1546_v19 = vpop.eup %1545  ;;  %v778_v21 = vrot.slane %v777_v16, 1  ;;  %v780_v22 = vsel %vm521_vm1, %v1544_v26, 0.0  ;;  %1441 = vmatprep.mubr.msk.f32.mxu0 %vm521_vm1, %v816_v12 }
 0x27d   :  { %v769_v60 = vrot.slane %v768_v17, 2  ;;  %v789_v43 = vadd.f32 %v788_v18, %v787_v10  ;;  %v781_v8 = vrot.slane %v780_v22, 4  ;;  %v818_v23 = vmul.f32 %v1546_v19, %v1799_v39  ;;  %v1548_v24 = vpop.eup %1547 }
 0x27e   :  { %v779_v30 = vadd.f32 %v778_v21, %v777_v16  ;;  %v819_v38 = vmul.f32 %v1548_v24, %v1788_v13  ;;  %v1550_v39 = vpop.eup %1549 }
 0x27f   :  { %v770_v28 = vadd.f32 %v769_v60, %v768_v17  ;;  %v790_v29 = vrot.slane %v789_v43, 2  ;;  %v782_v31 = vadd.f32 %v781_v8, %v780_v22  ;;  %1442 = vmatmul.mubr.msk.f32.gmra.mrb[8].mxu0 %vm521_vm1, %v817_v25  ;;  %v821_v40 = vmul.f32 %v1550_v39, %v1803_v56  ;;  %v1154_v56 = vld [vmem:[%s1925_s5] sm:$0xff] }
 0x280   :  { %1444 = vmatprep.mubr.msk.f32.mxu0 %vm521_vm1, %v818_v23  ;;  %1553 = vrcp.f32 %v779_v30 }
 0x281   :  { %v771_v33 = vrot.slane %v770_v28, 1  ;;  %v791_v34 = vadd.f32 %v790_v29, %v789_v43  ;;  %v783_v36 = vrot.slane %v782_v31, 2 }
 0x283   :  { %v772_v44 = vadd.f32 %v771_v33, %v770_v28  ;;  %v792_v48 = vrot.slane %v791_v34, 1  ;;  %v784_v42 = vadd.f32 %v783_v36, %v782_v31  ;;  %1445 = vmatmul.mubr.msk.f32.gmra.mrb[10].mxu0 %vm521_vm1, %v819_v38 }
 0x284   :  { %v1552_v27 = vpop.eup %1551 }
 0x285   :  { %v793_v15 = vadd.f32 %v792_v48, %v791_v34  ;;  %v785_v20 = vrot.slane %v784_v42, 1  ;;  %1555 = vrcp.f32 %v772_v44  ;;  %v820_v46 = vmul.f32 %v1552_v27, %v1810_v37 }
 0x287   :  { %v786_v58 = vadd.f32 %v785_v20, %v784_v42  ;;  %1447 = vmatprep.mubr.msk.f32.mxu0 %vm521_vm1, %v820_v46  ;;  %1557 = vrcp.f32 %v793_v15 }
 0x288   :  { %1448 = vmatmul.mubr.msk.f32.gmra.mrb[12].mxu0 %vm521_vm1, %v821_v40 }
 0x289   :  { %1559 = vrcp.f32 %v786_v58  ;;  %v1870_v58 = vpop.permute.xlu1 %1022 }
 0x28a   :  { %v1554_v13 = vpop.eup %1553 }
 0x28b   :  { %v823_v47 = vmul.f32 %v1554_v13, %v1818_v0  ;;  %v1155_v0 = vld [vmem:[%s1925_s5 + $0x8] sm:$0xff] }
 0x28c   :  { %v1483_v51 = vpack.c.bf16 %v1155_v0, %v1154_v56 }
 0x28e   :  { %1484 = vmatprep.subr.bf16.mxu1 %v1483_v51 }
 0x28f   :  { %v1556_v41 = vpop.eup %1555  ;;  %1486 = vmatpush3.bf16.msra.mxu1 %v1483_v51 }
 0x290   :  { %v822_v35 = vmul.f32 %v1556_v41, %v1536_v2  ;;  %1488 = vmatprep.subr.bf16.mxu1 %v1487_v53 }
 0x291   :  { %v1558_v49 = vpop.eup %1557 }
 0x292   :  { %1450 = vmatprep.mubr.msk.f32.mxu0 %vm521_vm1, %v822_v35  ;;  %v825_v50 = vmul.f32 %v1558_v49, %v1540_v6 }
 0x293   :  { %v1560_v45 = vpop.eup %1559  ;;  %1451 = vmatmul.mubr.msk.f32.gmra.mrb[14].mxu0 %vm521_vm1, %v823_v47  ;;  %1490 = vmatpush3.bf16.msra.mxu1 %v1487_v53 }
 0x294   :  { %v824_v37 = vmul.f32 %v1560_v45, %v1544_v26 }
 0x296   :  { %1453 = vmatprep.mubr.msk.f32.mxu0 %vm521_vm1, %v824_v37 }
 0x297   :  { %1454 = vmatmul.mubr.msk.f32.gmra.mrb[16].mxu0 %vm521_vm1, %v825_v50 }
 0x344   :  { %v1434_v54 = vpop.f32.mrb[2].mxu0 }
 0x345   :  { %v1027_v55 = vmul.f32 %v1434_v54, %v1021_v32  ;;  %v941_v57 = vpop.f32.mrb[3].mxu0 }
 0x346   :  { %v1026_v62 = vmul.f32 %v1021_v32, %v941_v57 }
 0x347   :  { %v1049_v63 = vsel %vm40_vm0, %v1027_v55, 0.0 }
 0x348   :  { %v1050_v1 = vrot.slane %v1049_v63, 4  ;;  %v1042_v2 = vsel %vm40_vm0, %v1026_v62, 0.0 }
 0x349   :  { %v1043_v3 = vrot.slane %v1042_v2, 4 }
 0x34a   :  { %v1437_v4 = vpop.f32.mrb[4].mxu0  ;;  %v1051_v5 = vadd.f32 %v1050_v1, %v1049_v63 }
 0x34b   :  { %v1029_v61 = vmul.f32 %v1437_v4, %v1021_v32  ;;  %v951_v6 = vpop.f32.mrb[5].mxu0  ;;  %v1044_v9 = vadd.f32 %v1043_v3, %v1042_v2 }
 0x34c   :  { %v1028_v7 = vmul.f32 %v1021_v32, %v951_v6  ;;  %v1052_v11 = vrot.slane %v1051_v5, 2 }
 0x34d   :  { %v1063_v12 = vsel %vm40_vm0, %v1029_v61, 0.0  ;;  %v1045_v14 = vrot.slane %v1044_v9, 2 }
 0x34e   :  { %v1064_v16 = vrot.slane %v1063_v12, 4  ;;  %v1056_v10 = vsel %vm40_vm0, %v1028_v7, 0.0  ;;  %v1440_v26 = vpop.f32.mrb[6].mxu0  ;;  %v1053_v17 = vadd.f32 %v1052_v11, %v1051_v5 }
 0x34f   :  { %v1057_v18 = vrot.slane %v1056_v10, 4  ;;  %v1031_v19 = vmul.f32 %v1440_v26, %v1021_v32  ;;  %v961_v21 = vpop.f32.mrb[7].mxu0  ;;  %v1046_v22 = vadd.f32 %v1045_v14, %v1044_v9 }
 0x350   :  { %v1065_v25 = vadd.f32 %v1064_v16, %v1063_v12  ;;  %v1030_v60 = vmul.f32 %v1021_v32, %v961_v21  ;;  %v1054_v43 = vrot.slane %v1053_v17, 1 }
 0x351   :  { %v1058_v8 = vadd.f32 %v1057_v18, %v1056_v10  ;;  %v1077_v23 = vsel %vm40_vm0, %v1031_v19, 0.0  ;;  %v1047_v24 = vrot.slane %v1046_v22, 1 }
 0x352   :  { %v1066_v28 = vrot.slane %v1065_v25, 2  ;;  %v1078_v29 = vrot.slane %v1077_v23, 4  ;;  %v1070_v31 = vsel %vm40_vm0, %v1030_v60, 0.0  ;;  %v1443_v30 = vpop.f32.mrb[8].mxu0  ;;  %v1055_v33 = vadd.f32 %v1054_v43, %v1053_v17 }
 0x353   :  { %v1059_v34 = vrot.slane %v1058_v8, 2  ;;  %v1071_v36 = vrot.slane %v1070_v31, 4  ;;  %v1033_v38 = vmul.f32 %v1443_v30, %v1021_v32  ;;  %v971_v44 = vpop.f32.mrb[9].mxu0  ;;  %v1048_v48 = vadd.f32 %v1047_v24, %v1046_v22 }
 0x354   :  { %v1067_v42 = vadd.f32 %v1066_v28, %v1065_v25  ;;  %v1079_v39 = vadd.f32 %v1078_v29, %v1077_v23  ;;  %v1032_v27 = vmul.f32 %v1021_v32, %v971_v44 }
 0x355   :  { %v1060_v15 = vadd.f32 %v1059_v34, %v1058_v8  ;;  %v1072_v20 = vadd.f32 %v1071_v36, %v1070_v31  ;;  %v1091_v46 = vsel %vm40_vm0, %v1033_v38, 0.0  ;;  %v1182_v40 = vsel %vm1181_vm2, %v1055_v33, %v1048_v48 }
 0x356   :  { %v1068_v13 = vrot.slane %v1067_v42, 1  ;;  %v1080_v41 = vrot.slane %v1079_v39, 2  ;;  %v1092_v35 = vrot.slane %v1091_v46, 4  ;;  %v1446_v47 = vpop.f32.mrb[10].mxu0  ;;  %v1084_v37 = vsel %vm40_vm0, %v1032_v27, 0.0 }
 0x357   :  { %v1061_v49 = vrot.slane %v1060_v15, 1  ;;  %v1073_v45 = vrot.slane %v1072_v20, 2  ;;  %v1035_v50 = vmul.f32 %v1446_v47, %v1870_v58  ;;  %v981_v56 = vpop.f32.mrb[11].mxu0  ;;  %v1085_v59 = vrot.slane %v1084_v37, 4 }
 0x358   :  { %v1081_v0 = vadd.f32 %v1080_v41, %v1079_v39  ;;  %v1093_v51 = vadd.f32 %v1092_v35, %v1091_v46  ;;  %v1034_v54 = vmul.f32 %v1870_v58, %v981_v56  ;;  %v1069_v1 = vadd.f32 %v1068_v13, %v1067_v42 }
 0x359   :  { %v1062_v52 = vadd.f32 %v1061_v49, %v1060_v15  ;;  %v1074_v53 = vadd.f32 %v1073_v45, %v1072_v20  ;;  %v1105_v32 = vsel %vm40_vm0, %v1035_v50, 0.0  ;;  %v1086_v62 = vadd.f32 %v1085_v59, %v1084_v37 }
 0x35a   :  { %v1082_v55 = vrot.slane %v1081_v0, 1  ;;  %v1094_v57 = vrot.slane %v1093_v51, 2  ;;  %v1106_v63 = vrot.slane %v1105_v32, 4  ;;  %v1098_v4 = vsel %vm40_vm0, %v1034_v54, 0.0 }
 0x35b   :  { %v1184_v2 = vsel %vm1183_vm3, %v1062_v52, %v1182_v40  ;;  %v1075_v3 = vrot.slane %v1074_v53, 1  ;;  %v1087_v61 = vrot.slane %v1086_v62, 2  ;;  %v1449_v9 = vpop.f32.mrb[12].mxu0  ;;  %v1099_v11 = vrot.slane %v1098_v4, 4 }
 0x35c   :  { %v1095_v5 = vadd.f32 %v1094_v57, %v1093_v51  ;;  %v1107_v6 = vadd.f32 %v1106_v63, %v1105_v32  ;;  %v1037_v12 = vmul.f32 %v1449_v9, %v1870_v58  ;;  %v991_v14 = vpop.f32.mrb[13].mxu0  ;;  %v1186_v16 = vsel %vm1185_vm4, %v1069_v1, %v1184_v2 }
 0x35d   :  { %v1076_v7 = vadd.f32 %v1075_v3, %v1074_v53  ;;  %v1083_v10 = vadd.f32 %v1082_v55, %v1081_v0  ;;  %v1088_v26 = vadd.f32 %v1087_v61, %v1086_v62  ;;  %v1036_v18 = vmul.f32 %v1870_v58, %v991_v14 }
 0x35e   :  { %v1108_v17 = vrot.slane %v1107_v6, 2  ;;  %v1096_v19 = vrot.slane %v1095_v5, 1  ;;  %v1100_v21 = vadd.f32 %v1099_v11, %v1098_v4  ;;  %v1119_v22 = vsel %vm40_vm0, %v1037_v12, 0.0 }
 0x35f   :  { %v1188_v25 = vsel %vm1187_vm5, %v1076_v7, %v1186_v16  ;;  %v1089_v60 = vrot.slane %v1088_v26, 1  ;;  %v1120_v8 = vrot.slane %v1119_v22, 4  ;;  %v1112_v24 = vsel %vm40_vm0, %v1036_v18, 0.0 }
 0x360   :  { %v1109_v43 = vadd.f32 %v1108_v17, %v1107_v6  ;;  %v1101_v23 = vrot.slane %v1100_v21, 2  ;;  %v1190_v28 = vsel %vm1189_vm6, %v1083_v10, %v1188_v25  ;;  %v1113_v33 = vrot.slane %v1112_v24, 4 }
 0x361   :  { %v1090_v29 = vadd.f32 %v1089_v60, %v1088_v26  ;;  %v1121_v30 = vadd.f32 %v1120_v8, %v1119_v22  ;;  %v1097_v34 = vadd.f32 %v1096_v19, %v1095_v5 }
 0x362   :  { %v1110_v31 = vrot.slane %v1109_v43, 1  ;;  %v1102_v36 = vadd.f32 %v1101_v23, %v1100_v21  ;;  %v1114_v44 = vadd.f32 %v1113_v33, %v1112_v24 }
 0x363   :  { %v1122_v38 = vrot.slane %v1121_v30, 2  ;;  %v1192_v48 = vsel %vm1191_vm7, %v1090_v29, %v1190_v28  ;;  %v1335_v28 = vld [vmem:[%s1926_s6] ss:$0 sm:$0xff] }
 0x364   :  { %v1111_v42 = vadd.f32 %v1110_v31, %v1109_v43  ;;  %v1103_v39 = vrot.slane %v1102_v36, 1  ;;  %v1194_v27 = vsel %vm1193_vm8, %v1097_v34, %v1192_v48  ;;  %v1115_v20 = vrot.slane %v1114_v44, 2 }
 0x365   :  { %v1123_v15 = vadd.f32 %v1122_v38, %v1121_v30  ;;  %1464 = vmatprep.mubr.msk.f32.mxu1 %vm40_vm0, %v1194_v27 }
 0x366   :  { %v1452_v46 = vpop.f32.mrb[14].mxu0  ;;  %v1104_v40 = vadd.f32 %v1103_v39, %v1102_v36  ;;  %v1116_v35 = vadd.f32 %v1115_v20, %v1114_v44 }
 0x367   :  { %v1039_v13 = vmul.f32 %v1452_v46, %v1870_v58  ;;  %v1001_v41 = vpop.f32.mrb[15].mxu0  ;;  %v1124_v45 = vrot.slane %v1123_v15, 1 }
 0x368   :  { %v1038_v47 = vmul.f32 %v1870_v58, %v1001_v41  ;;  %v1195_v49 = vsel %vm1181_vm2, %v1111_v42, %v1104_v40  ;;  %v1117_v50 = vrot.slane %v1116_v35, 1 }
 0x369   :  { %v1133_v37 = vsel %vm40_vm0, %v1039_v13, 0.0  ;;  %v1125_v57 = vadd.f32 %v1124_v45, %v1123_v15 }
 0x36a   :  { %v1134_v56 = vrot.slane %v1133_v37, 4  ;;  %v1126_v0 = vsel %vm40_vm0, %v1038_v47, 0.0  ;;  %v1455_v51 = vpop.f32.mrb[16].mxu0  ;;  %v1118_v32 = vadd.f32 %v1117_v50, %v1116_v35 }
 0x36b   :  { %v1127_v59 = vrot.slane %v1126_v0, 4  ;;  %v1041_v52 = vmul.f32 %v1455_v51, %v1870_v58  ;;  %v1011_v53 = vpop.f32.mrb[17].mxu0 }
 0x36c   :  { %v1135_v54 = vadd.f32 %v1134_v56, %v1133_v37  ;;  %v1040_v55 = vmul.f32 %v1870_v58, %v1011_v53  ;;  %v1196_v1 = vsel %vm1183_vm3, %v1118_v32, %v1195_v49 }
 0x36d   :  { %v1128_v62 = vadd.f32 %v1127_v59, %v1126_v0  ;;  %v1147_v63 = vsel %vm40_vm0, %v1041_v52, 0.0  ;;  %v1197_v61 = vsel %vm1185_vm4, %v1125_v57, %v1196_v1 }
 0x36e   :  { %v1136_v2 = vrot.slane %v1135_v54, 2  ;;  %v1148_v3 = vrot.slane %v1147_v63, 4  ;;  %v1140_v4 = vsel %vm40_vm0, %v1040_v55, 0.0 }
 0x36f   :  { %v1129_v5 = vrot.slane %v1128_v62, 2  ;;  %v1141_v6 = vrot.slane %v1140_v4, 4 }
 0x370   :  { %v1137_v9 = vadd.f32 %v1136_v2, %v1135_v54  ;;  %v1149_v7 = vadd.f32 %v1148_v3, %v1147_v63 }
 0x371   :  { %v1130_v11 = vadd.f32 %v1129_v5, %v1128_v62  ;;  %v1142_v12 = vadd.f32 %v1141_v6, %v1140_v4 }
 0x372   :  { %v1138_v14 = vrot.slane %v1137_v9, 1  ;;  %v1150_v58 = vrot.slane %v1149_v7, 2 }
 0x373   :  { %v1131_v16 = vrot.slane %v1130_v11, 1  ;;  %v1143_v10 = vrot.slane %v1142_v12, 2 }
 0x374   :  { %v1151_v26 = vadd.f32 %v1150_v58, %v1149_v7  ;;  %v1139_v19 = vadd.f32 %v1138_v14, %v1137_v9 }
 0x375   :  { %v1132_v17 = vadd.f32 %v1131_v16, %v1130_v11  ;;  %v1144_v18 = vadd.f32 %v1143_v10, %v1142_v12 }
 0x376   :  { %v1152_v21 = vrot.slane %v1151_v26, 1 }
 0x377   :  { %v1198_v22 = vsel %vm1187_vm5, %v1132_v17, %v1197_v61  ;;  %v1145_v25 = vrot.slane %v1144_v18, 1 }
 0x378   :  { %v1199_v60 = vsel %vm1189_vm6, %v1139_v19, %v1198_v22  ;;  %v1153_v8 = vadd.f32 %v1152_v21, %v1151_v26 }
 0x379   :  { %v1146_v43 = vadd.f32 %v1145_v25, %v1144_v18 }
 0x37b   :  { %v1200_v23 = vsel %vm1191_vm7, %v1146_v43, %v1199_v60 }
 0x37c   :  { %v1201_v24 = vsel %vm1193_vm8, %v1153_v8, %v1200_v23 }
 0x37d   :  { %1465 = vmatmul.mubr.msk.f32.vlgmr.msra.gmra.mrb[16].mxu1 %vm40_vm0, %v1201_v24 }
 0x450   :  { %v1466_v29 = vpop.f32.mrb[16].mxu1 }
 0x451   :  { %v1278_v31 = vadd.f32 %v1466_v29, %v1335_v28  ;;  %v1272_v30 = vpop.f32.mrb[17].mxu1 }
 0x452   :  { %v1273_v33 = vadd.f32 %v1335_v28, %v1272_v30 }
 0x453   :  { %1283 = vst.msk [vmem:[#allocation2 + $0x8] sm:$0xff] %vm1281_vm9, %v1278_v31 }
 0x454   :  { %1282 = vst.msk [vmem:[#allocation2] sm:$0xff] %vm1281_vm9, %v1273_v33 }
 0x455   :  { %1572 = shalt.err (!%p1569_p4)
}
 0x456   :  { %s1573_s6 = scalar_lea.hbm %s1927_s7, 256 }
 0x457   :  { %p1574_p5 = scmp.ne.s32.totalorder %s1927_s7, %s1573_s6  ;;  %p1577_p6 = scmp.lt.u32.totalorder %s1573_s6, %s1927_s7 }
 0x459   :  { %p1579_p7 = pnand %p1577_p6, %p1574_p5 }
 0x45b   :  { %1582 = shalt.err (!%p1579_p7)
}
 0x45c   :  { %s1589_s16 = smov 128   ;;  %s1590_s17 = smov 8  }
 0x45d   :  { %1295 = dma.vmem_to_hbm [thread:$0]  %s1290_s9, 256, %s1927_s7, [#allocation3], %s1589_s16, %s1589_s16, %s1590_s17  }
 0x45e   :  { %1583 = dma.done.wait [#allocation3], 256  }
 0x45f   :  { %1584 = vsyncadd [#allocation3], 4294967040 }
 0x460   :  { %1299 = vsyncpa [#allocation3], 1 }

</bundles_post_ra>
